<compile_context>
chip_gen: v6e
topology: v6e:2x2x1
jax: 0.10.0
libtpu: 0.0.40
codegen_flags: <defaults>
</compile_context>

<pallas_src>
import jax
import jax.numpy as jnp
from jax.experimental import pallas as pl
from jax.experimental.pallas import tpu as pltpu

LANE = 128
SUBLANE = 8


def _round_up(x, m):
    return ((x + m - 1) // m) * m


# ----------------------------------------------------------------------------
# Deterministic parameter init (mirrors torch weight_init for nn.Linear:
# orthogonal_ weight with gain=1, zero bias).
# ----------------------------------------------------------------------------
def orthogonal(key, out_dim, in_dim, dtype=jnp.float32):
    """Orthogonal matrix of shape (out_dim, in_dim), like torch.nn.init.orthogonal_."""
    rows, cols = out_dim, in_dim
    transpose = rows < cols
    n, m = (cols, rows) if transpose else (rows, cols)
    a = jax.random.normal(key, (n, m), dtype=jnp.float32)
    q, r = jnp.linalg.qr(a)
    d = jnp.diag(r)
    q = q * jnp.where(d >= 0, 1.0, -1.0)[None, :]
    if transpose:
        q = q.T
    return q.astype(dtype)


def make_actor_params(state_dim, action_dim, hidden_dim, key):
    k1, k2, k3 = jax.random.split(key, 3)
    # torch stores (out, in); we store transposed (in, out) for x @ W.
    w1 = orthogonal(k1, hidden_dim, state_dim).T           # (state_dim, hidden)
    w2 = orthogonal(k2, hidden_dim, hidden_dim).T          # (hidden, hidden)
    w3 = orthogonal(k3, action_dim, hidden_dim).T          # (hidden, action_dim)
    b1 = jnp.zeros((1, hidden_dim), jnp.float32)
    b2 = jnp.zeros((1, hidden_dim), jnp.float32)
    b3 = jnp.zeros((1, action_dim), jnp.float32)
    return w1, b1, w2, b2, w3, b3


def prepare_actor_params(params, compute_dtype=jnp.float32):
    """Pad the hidden dim to a lane multiple (128) and cast MXU operands.

    Zero padding preserves the math exactly: padded hidden units have zero
    weights + zero bias -> relu(0)=0 -> contribute nothing downstream.  The
    action (output) columns of w3/b3 are left UNPADDED: the kernel writes a
    narrow (tb, action_dim) output block directly.  Biases stay f32 (added
    post-MXU in f32).  Do this ONCE, not per call.
    """
    w1, b1, w2, b2, w3, b3 = params
    s_dim, h_dim = w1.shape
    a_dim = w3.shape[1]
    hp = _round_up(h_dim, LANE)

    def pad2(x, r, c):
        return jnp.pad(x, ((0, r - x.shape[0]), (0, c - x.shape[1])))

    w1p = pad2(w1, s_dim, hp).astype(compute_dtype)
    w2p = pad2(w2, hp, hp).astype(compute_dtype)
    w3p = pad2(w3, hp, a_dim).astype(compute_dtype)        # pad rows only
    b1p = pad2(b1, 1, hp).astype(jnp.float32)
    b2p = pad2(b2, 1, hp).astype(jnp.float32)
    b3p = b3.astype(jnp.float32)                           # (1, action_dim)
    return (w1p, b1p, w2p, b2p, w3p, b3p), a_dim


# ----------------------------------------------------------------------------
# Pallas kernel: fused 3-layer MLP (matmuls on MXU, relu on VPU, tanh on EUP).
# ----------------------------------------------------------------------------
def actor_kernel(ma_ref, x_ref, w1_ref, b1_ref, w2_ref, b2_ref, w3_ref, b3_ref,
                 o_ref):
    max_action = ma_ref[0, 0]                 # SMEM scalar
    wdt = w1_ref.dtype                        # matmul operand dtype (f32 or bf16)
    # In-kernel cast (free under DMA) instead of a separate wrapper-side pass.
    x = x_ref[...].astype(wdt)
    # Layer 1: MXU matmul (f32 accumulate) + f32 bias + relu.
    h = jnp.dot(x, w1_ref[...], preferred_element_type=jnp.float32) + b1_ref[...]
    h = jnp.maximum(h, 0.0)
    # Layer 2.
    h = jnp.dot(h.astype(wdt), w2_ref[...],
                preferred_element_type=jnp.float32) + b2_ref[...]
    h = jnp.maximum(h, 0.0)
    # Layer 3 + bounded action head (tanh in f32, narrow store).
    z = jnp.dot(h.astype(wdt), w3_ref[...],
                preferred_element_type=jnp.float32) + b3_ref[...]
    o_ref[...] = (max_action * jnp.tanh(z)).astype(o_ref.dtype)


def _choose_tb(batch, block_b):
    """Batch tile: multiple of 8 sublanes; >=2 grid steps when batch allows it
    so the ("parallel",) batch axis feeds both v7x TensorCores."""
    tb_full = _round_up(batch, SUBLANE)
    if batch > SUBLANE:
        half = _round_up(pl.cdiv(batch, 2), SUBLANE)
        tb = min(block_b, half)
    else:
        tb = min(block_b, tb_full)
    return max(SUBLANE, min(tb, tb_full))


def actor_forward(state, padded_params, max_action, action_dim, *, block_b=1024):
    """state: (B, state_dim) f32.  padded_params from prepare_actor_params."""
    w1, b1, w2, b2, w3, b3 = padded_params
    batch, s_dim = state.shape
    hp = w1.shape[1]
    a_dim = w3.shape[1]
    assert a_dim == action_dim

    tb = _choose_tb(batch, block_b)
    grid = (pl.cdiv(batch, tb),)

    ma = jnp.full((1, 1), max_action, dtype=jnp.float32)

    def batch_spec(cols):
        return pl.BlockSpec((tb, cols), lambda i: (i, 0))

    def resident(arr):                        # whole array, VMEM-resident
        return pl.BlockSpec(arr.shape, lambda i: (0, 0))

    # Cost estimate with the real (narrow) memory footprint.
    flops = 2 * batch * (s_dim * hp + hp * hp + hp * a_dim)
    weight_bytes = sum(int(a.size) * a.dtype.itemsize
                       for a in (w1, b1, w2, b2, w3, b3))
    bytes_accessed = (batch * s_dim * state.dtype.itemsize   # state read
                      + weight_bytes                         # params
                      + batch * a_dim * 4)                   # narrow f32 output
    cost = pl.CostEstimate(flops=flops,
                           transcendentals=batch * a_dim,
                           bytes_accessed=bytes_accessed)

    # VMEM budget: double-buffered state/output tiles + resident weights +
    # headroom for f32 intermediates, instead of a blanket 32 MiB.
    io_bytes = 2 * (tb * s_dim * state.dtype.itemsize + tb * a_dim * 4)
    scratch_bytes = 6 * tb * hp * 4
    vmem_limit = int(1.5 * (io_bytes + weight_bytes + scratch_bytes)) + (2 << 20)
    vmem_limit = max(8 << 20, min(vmem_limit, 96 << 20))

    out = pl.pallas_call(
        actor_kernel,
        out_shape=jax.ShapeDtypeStruct((batch, a_dim), jnp.float32),
        grid=grid,
        in_specs=[
            pl.BlockSpec(memory_space=pltpu.MemorySpace.SMEM),   # max_action
            batch_spec(s_dim),                                   # state tile (f32)
            resident(w1), resident(b1),
            resident(w2), resident(b2),
            resident(w3), resident(b3),
        ],
        out_specs=batch_spec(a_dim),
        compiler_params=pltpu.CompilerParams(
            dimension_semantics=("parallel",),          # megacore on v7x
            vmem_limit_bytes=vmem_limit,
        ),
        cost_estimate=cost,
    )(ma, state, w1, b1, w2, b2, w3, b3)

    return out


if __name__ == "__main__":
    state_dim, action_dim, hidden_dim = 16, 8, 32
    batch = 8
    max_action = 2.0

    key = jax.random.PRNGKey(0)
    kp, kx = jax.random.split(key)
    params = make_actor_params(state_dim, action_dim, hidden_dim, kp)
    state = jax.random.normal(kx, (batch, state_dim), dtype=jnp.float32)

    # Pure-JAX reference of the same math (unpadded f32 weights).
    w1, b1, w2, b2, w3, b3 = params
    h1 = jnp.maximum(state @ w1 + b1, 0.0)
    h2 = jnp.maximum(h1 @ w2 + b2, 0.0)
    ref = max_action * jnp.tanh(h2 @ w3 + b3)

    # f32 operand path (exact).
    p32, adim = prepare_actor_params(params, jnp.float32)
    out32 = jax.block_until_ready(actor_forward(state, p32, max_action, adim))
    assert out32.shape == (batch, action_dim)
    assert jnp.allclose(out32, ref, atol=1e-5), "f32 mismatch vs reference"

    # bf16 operand path (f32 accumulate) — valid on v5e/v6e/v7x alike.
    pbf, adim = prepare_actor_params(params, jnp.bfloat16)
    outbf = jax.block_until_ready(actor_forward(state, pbf, max_action, adim))
    assert outbf.shape == (batch, action_dim)
    assert jnp.allclose(outbf, ref, atol=1e-1), "bf16 mismatch vs reference"

    print("KERNEL_OK")
</pallas_src>

<mosaic_0001>
module attributes {stable_mosaic.version = 11 : i64} {
  func.func @actor_kernel(%arg0: i32, %arg1: memref<1x1xf32, #tpu.memory_space<smem>>, %arg2: memref<8x16xf32, #tpu.memory_space<vmem>>, %arg3: memref<16x128xf32, #tpu.memory_space<vmem>>, %arg4: memref<1x128xf32, #tpu.memory_space<vmem>>, %arg5: memref<128x128xf32, #tpu.memory_space<vmem>>, %arg6: memref<1x128xf32, #tpu.memory_space<vmem>>, %arg7: memref<128x8xf32, #tpu.memory_space<vmem>>, %arg8: memref<1x8xf32, #tpu.memory_space<vmem>>, %arg9: memref<8x8xf32, #tpu.memory_space<vmem>>) attributes {dimension_semantics = [#tpu.dimension_semantics<parallel>], iteration_bounds = array<i64: 1>, scalar_prefetch = 0 : i64, scratch_operands = 0 : i64, tpu.core_type = #tpu.core_type<tc>, window_params = [{transform_indices = @transform_0, window_bounds = array<i64: 1, 1>}, {transform_indices = @transform_1, window_bounds = array<i64: 8, 16>}, {pipeline_mode = #tpu.pipeline_mode<synchronous>, transform_indices = @transform_2, window_bounds = array<i64: 16, 128>}, {pipeline_mode = #tpu.pipeline_mode<synchronous>, transform_indices = @transform_3, window_bounds = array<i64: 1, 128>}, {pipeline_mode = #tpu.pipeline_mode<synchronous>, transform_indices = @transform_4, window_bounds = array<i64: 128, 128>}, {pipeline_mode = #tpu.pipeline_mode<synchronous>, transform_indices = @transform_5, window_bounds = array<i64: 1, 128>}, {pipeline_mode = #tpu.pipeline_mode<synchronous>, transform_indices = @transform_6, window_bounds = array<i64: 128, 8>}, {pipeline_mode = #tpu.pipeline_mode<synchronous>, transform_indices = @transform_7, window_bounds = array<i64: 1, 8>}, {transform_indices = @transform_8, window_bounds = array<i64: 8, 8>}]} {
    %c0 = arith.constant 0 : index
    %c0_0 = arith.constant 0 : index
    %0 = memref.load %arg1[%c0, %c0_0] : memref<1x1xf32, #tpu.memory_space<smem>>
    %c0_1 = arith.constant 0 : index
    %c0_2 = arith.constant 0 : index
    %1 = vector.load %arg2[%c0_1, %c0_2] : memref<8x16xf32, #tpu.memory_space<vmem>>, vector<8x16xf32>
    %c0_3 = arith.constant 0 : index
    %c0_4 = arith.constant 0 : index
    %2 = vector.load %arg3[%c0_3, %c0_4] : memref<16x128xf32, #tpu.memory_space<vmem>>, vector<16x128xf32>
    %cst = arith.constant dense<0.000000e+00> : vector<8x128xf32>
    %3 = tpu.matmul %1, %2, %cst {dimension_numbers = #tpu.dot_dimension_numbers<[1], [0], [0], [1], [0, 0, 1, 1], [], []>} : vector<8x16xf32>, vector<16x128xf32>, vector<8x128xf32> -> vector<8x128xf32>
    %c0_5 = arith.constant 0 : index
    %c0_6 = arith.constant 0 : index
    %4 = vector.load %arg4[%c0_5, %c0_6] : memref<1x128xf32, #tpu.memory_space<vmem>>, vector<1x128xf32>
    %5 = vector.broadcast %4 : vector<1x128xf32> to vector<8x128xf32>
    %6 = arith.addf %3, %5 : vector<8x128xf32>
    %cst_7 = arith.constant 0.000000e+00 : f32
    %7 = vector.broadcast %cst_7 : f32 to vector<8x128xf32>
    %8 = arith.maximumf %6, %7 : vector<8x128xf32>
    %c0_8 = arith.constant 0 : index
    %c0_9 = arith.constant 0 : index
    %9 = vector.load %arg5[%c0_8, %c0_9] : memref<128x128xf32, #tpu.memory_space<vmem>>, vector<128x128xf32>
    %cst_10 = arith.constant dense<0.000000e+00> : vector<8x128xf32>
    %10 = tpu.matmul %8, %9, %cst_10 {dimension_numbers = #tpu.dot_dimension_numbers<[1], [0], [0], [1], [0, 0, 1, 1], [], []>} : vector<8x128xf32>, vector<128x128xf32>, vector<8x128xf32> -> vector<8x128xf32>
    %c0_11 = arith.constant 0 : index
    %c0_12 = arith.constant 0 : index
    %11 = vector.load %arg6[%c0_11, %c0_12] : memref<1x128xf32, #tpu.memory_space<vmem>>, vector<1x128xf32>
    %12 = vector.broadcast %11 : vector<1x128xf32> to vector<8x128xf32>
    %13 = arith.addf %10, %12 : vector<8x128xf32>
    %cst_13 = arith.constant 0.000000e+00 : f32
    %14 = vector.broadcast %cst_13 : f32 to vector<8x128xf32>
    %15 = arith.maximumf %13, %14 : vector<8x128xf32>
    %c0_14 = arith.constant 0 : index
    %c0_15 = arith.constant 0 : index
    %16 = vector.load %arg7[%c0_14, %c0_15] : memref<128x8xf32, #tpu.memory_space<vmem>>, vector<128x8xf32>
    %cst_16 = arith.constant dense<0.000000e+00> : vector<8x8xf32>
    %17 = tpu.matmul %15, %16, %cst_16 {dimension_numbers = #tpu.dot_dimension_numbers<[1], [0], [0], [1], [0, 0, 1, 1], [], []>} : vector<8x128xf32>, vector<128x8xf32>, vector<8x8xf32> -> vector<8x8xf32>
    %c0_17 = arith.constant 0 : index
    %c0_18 = arith.constant 0 : index
    %18 = vector.load %arg8[%c0_17, %c0_18] : memref<1x8xf32, #tpu.memory_space<vmem>>, vector<1x8xf32>
    %19 = vector.broadcast %18 : vector<1x8xf32> to vector<8x8xf32>
    %20 = arith.addf %17, %19 : vector<8x8xf32>
    %21 = math.tanh %20 : vector<8x8xf32>
    %22 = vector.broadcast %0 : f32 to vector<8x8xf32>
    %23 = arith.mulf %22, %21 : vector<8x8xf32>
    %c0_19 = arith.constant 0 : index
    %c0_20 = arith.constant 0 : index
    %24 = vector.load %arg9[%c0_19, %c0_20] : memref<8x8xf32, #tpu.memory_space<vmem>>, vector<8x8xf32>
    tpu.vector_store %arg9[%c0_19, %c0_20], %23 {strides = array<i32>} : memref<8x8xf32, #tpu.memory_space<vmem>>, vector<8x8xf32>,
    return
  }
  func.func @transform_0(%arg0: i32) -> (i32, i32) {
    %c0_i32 = arith.constant 0 : i32
    %c0_i32_0 = arith.constant 0 : i32
    %c0_i32_1 = arith.constant 0 : i32
    return %c0_i32, %c0_i32_0 : i32, i32
  }
  func.func @transform_1(%arg0: i32) -> (i32, i32) {
    %c0_i32 = arith.constant 0 : i32
    %c0_i32_0 = arith.constant 0 : i32
    return %arg0, %c0_i32 : i32, i32
  }
  func.func @transform_2(%arg0: i32) -> (i32, i32) {
    %c0_i32 = arith.constant 0 : i32
    %c0_i32_0 = arith.constant 0 : i32
    %c0_i32_1 = arith.constant 0 : i32
    return %c0_i32, %c0_i32_0 : i32, i32
  }
  func.func @transform_3(%arg0: i32) -> (i32, i32) {
    %c0_i32 = arith.constant 0 : i32
    %c0_i32_0 = arith.constant 0 : i32
    %c0_i32_1 = arith.constant 0 : i32
    return %c0_i32, %c0_i32_0 : i32, i32
  }
  func.func @transform_4(%arg0: i32) -> (i32, i32) {
    %c0_i32 = arith.constant 0 : i32
    %c0_i32_0 = arith.constant 0 : i32
    %c0_i32_1 = arith.constant 0 : i32
    return %c0_i32, %c0_i32_0 : i32, i32
  }
  func.func @transform_5(%arg0: i32) -> (i32, i32) {
    %c0_i32 = arith.constant 0 : i32
    %c0_i32_0 = arith.constant 0 : i32
    %c0_i32_1 = arith.constant 0 : i32
    return %c0_i32, %c0_i32_0 : i32, i32
  }
  func.func @transform_6(%arg0: i32) -> (i32, i32) {
    %c0_i32 = arith.constant 0 : i32
    %c0_i32_0 = arith.constant 0 : i32
    %c0_i32_1 = arith.constant 0 : i32
    return %c0_i32, %c0_i32_0 : i32, i32
  }
  func.func @transform_7(%arg0: i32) -> (i32, i32) {
    %c0_i32 = arith.constant 0 : i32
    %c0_i32_0 = arith.constant 0 : i32
    %c0_i32_1 = arith.constant 0 : i32
    return %c0_i32, %c0_i32_0 : i32, i32
  }
  func.func @transform_8(%arg0: i32) -> (i32, i32) {
    %c0_i32 = arith.constant 0 : i32
    %c0_i32_0 = arith.constant 0 : i32
    return %arg0, %c0_i32 : i32, i32
  }
}

</mosaic_0001>

<bundles_post_ra>
// kernel: tpu_custom_call.1
= control target key start
LH: loop header
LB: loop body
LE: loop exit
PB: predicated region body
PF: predicated region fallthrough
CT: control target
= control target key end

     0   :  { %14 = vsyncpa [#allocation4], 0  ;;  %s716_s0 = inlined_call_operand.<no memory space> [shape: f32[1,1], index: 0, kind: input, shape index: {}]   ;;  %s717_s1 = inlined_call_operand.vmem [shape: f32[8,16], index: 1, kind: input, shape index: {}]   ;;  %s718_s2 = inlined_call_operand.hbm [shape: f32[16,128], index: 2, kind: input, shape index: {}]   ;;  %s719_s3 = inlined_call_operand.vmem [shape: f32[1,128], index: 3, kind: input, shape index: {}]   ;;  %s720_s4 = inlined_call_operand.vmem [shape: f32[128,128], index: 4, kind: input, shape index: {}]   ;;  %s721_s5 = inlined_call_operand.vmem [shape: f32[1,128], index: 5, kind: input, shape index: {}]   ;;  %s722_s6 = inlined_call_operand.vmem [shape: f32[128,8], index: 6, kind: input, shape index: {}]   ;;  %s723_s7 = inlined_call_operand.vmem [shape: f32[1,8], index: 7, kind: input, shape index: {}]   ;;  %s724_s8 = inlined_call_operand.hbm [shape: f32[8,8], index: 8, kind: output, shape index: {}]  }
   0x1   :  { %15 = vsyncpa [#allocation5], 0  ;;  %s508_s27 = smov [#allocation3]  }
   0x2   :  { %s25_s28 = sshll.u32 %s508_s27, 4  ;;  %s26_s28 = int_to_ptr.vmem [resolvable:$true] %s25_s28 }
   0x3   :  { %s472_s29 = scalar_lea.vmem %s26_s28, 256  ;;  %p477_p1 = scmp.lt.s32.totalorder %s26_s28, %s26_s28 }
   0x4   :  { %p473_p0 = scmp.ne.s32.totalorder %s26_s28, %s472_s29  ;;  %p478_p2 = scmp.lt.s32.totalorder %s472_s29, %s472_s29 }
   0x6   :  { %p479_p3 = por %p478_p2, %p477_p1 }
   0x8   :  { %p480_p4 = pnand %p479_p3, %p473_p0 }
   0xa   :  { %483 = shalt.err (!%p480_p4)
}
   0xb   :  { %s509_s30 = smov 128   ;;  %s510_s9 = smov 8  }
   0xc   :  { %31 = dma.hbm_to_vmem [thread:$0]  %s718_s2, 256, %s26_s28, [#allocation4], %s509_s30, %s509_s30, %s510_s9  }
   0xd   :  { %504 = dma.done.wait [#allocation4], 256  }
   0xe   :  { %505 = vsyncadd [#allocation4], 4294967040  ;;  %v511_v0 = vmov 0.0   ;;  %vm512_vm0 = vmmov 0   ;;  %v48_v1 = vld [vmem:[#allocation3 + $0x8] sm:$0xff]  ;;  %v47_v2 = vld [vmem:[#allocation3] sm:$0xff]  ;;  %v319_v50 = vstv %s716_s0 }
   0xf   :  { %379 = vmatprep.subr.mxu0 %v511_v0  ;;  %383 = vmatprep.mubr.msk.f32.mxu0 %vm512_vm0, %v511_v0  ;;  %v46_v3 = vld [vmem:[%s717_s1] sm:$0xff]  ;;  %vm56_vm1 = vcmask 130048   ;;  %v146_v4 = vld [vmem:[%s720_s4 + $0x78] sm:$0xff]  ;;  %v145_v5 = vld [vmem:[%s720_s4 + $0x70] sm:$0xff]  ;;  %s513_s10 = smov [#allocation6]   ;;  %vm321_vm2 = vcmask 64512  }
  0x10   :  { %386 = vmatprep.subr.mxu1 %v511_v0  ;;  %418 = vmatprep.mubr.msk.f32.mxu1 %vm512_vm0, %v511_v0  ;;  %v144_v6 = vld [vmem:[%s720_s4 + $0x68] sm:$0xff]  ;;  %v143_v7 = vld [vmem:[%s720_s4 + $0x60] sm:$0xff]  ;;  %v142_v8 = vld [vmem:[%s720_s4 + $0x58] sm:$0xff]  ;;  %s329_s11 = sshll.u32 %s513_s10, 4  ;;  %s330_s11 = int_to_ptr.vmem [resolvable:$true] %s329_s11 }
  0x11   :  { %380 = vmatpush3.msra.mxu0 %v48_v1  ;;  %387 = vmatpush3.msra.mxu1 %v146_v4  ;;  %v141_v9 = vld [vmem:[%s720_s4 + $0x50] sm:$0xff]  ;;  %v140_v10 = vld [vmem:[%s720_s4 + $0x48] sm:$0xff]  ;;  %v139_v11 = vld [vmem:[%s720_s4 + $0x40] sm:$0xff]  ;;  %p489_p6 = scmp.lt.s32.totalorder %s330_s11, %s330_s11 }
  0x12   :  { %381 = vmatprep.subr.mxu0 %v511_v0  ;;  %388 = vmatprep.subr.mxu1 %v511_v0  ;;  %v138_v12 = vld [vmem:[%s720_s4 + $0x38] sm:$0xff]  ;;  %v137_v13 = vld [vmem:[%s720_s4 + $0x30] sm:$0xff]  ;;  %v136_v14 = vld [vmem:[%s720_s4 + $0x28] sm:$0xff] }
  0x13   :  { %382 = vmatpush3.msra.mxu0 %v47_v2  ;;  %389 = vmatpush3.msra.mxu1 %v145_v5  ;;  %v135_v15 = vld [vmem:[%s720_s4 + $0x20] sm:$0xff]  ;;  %v134_v16 = vld [vmem:[%s720_s4 + $0x18] sm:$0xff]  ;;  %v133_v17 = vld [vmem:[%s720_s4 + $0x10] sm:$0xff] }
  0x14   :  { %384 = vmatmul.mubr.msk.f32.vlgmr.msra.gmra.mxu0 %vm56_vm1, %v46_v3  ;;  %390 = vmatprep.subr.mxu1 %v511_v0  ;;  %v132_v18 = vld [vmem:[%s720_s4 + $0x8] sm:$0xff]  ;;  %v131_v19 = vld [vmem:[%s720_s4] sm:$0xff]  ;;  %v240_v20 = vld [vmem:[%s722_s6 + $0x78] sm:$0xff] }
  0x15   :  { %421 = vmatprep.subr.mxu0 %v511_v0  ;;  %391 = vmatpush3.msra.mxu1 %v144_v6  ;;  %v239_v21 = vld [vmem:[%s722_s6 + $0x70] sm:$0xff]  ;;  %v238_v22 = vld [vmem:[%s722_s6 + $0x68] sm:$0xff]  ;;  %v237_v23 = vld [vmem:[%s722_s6 + $0x60] sm:$0xff] }
  0x16   :  { %453 = vmatprep.mubr.msk.f32.mxu0 %vm512_vm0, %v511_v0  ;;  %392 = vmatprep.subr.mxu1 %v511_v0  ;;  %v236_v24 = vld [vmem:[%s722_s6 + $0x58] sm:$0xff]  ;;  %v235_v25 = vld [vmem:[%s722_s6 + $0x50] sm:$0xff]  ;;  %v234_v26 = vld [vmem:[%s722_s6 + $0x48] sm:$0xff] }
  0x17   :  { %393 = vmatpush3.msra.mxu1 %v143_v7  ;;  %422 = vmatpush3.msra.mxu0 %v240_v20  ;;  %v233_v27 = vld [vmem:[%s722_s6 + $0x40] sm:$0xff]  ;;  %v232_v28 = vld [vmem:[%s722_s6 + $0x38] sm:$0xff]  ;;  %v231_v29 = vld [vmem:[%s722_s6 + $0x30] sm:$0xff] }
  0x18   :  { %394 = vmatprep.subr.mxu1 %v511_v0  ;;  %423 = vmatprep.subr.mxu0 %v511_v0  ;;  %v230_v30 = vld [vmem:[%s722_s6 + $0x28] sm:$0xff]  ;;  %v229_v31 = vld [vmem:[%s722_s6 + $0x20] sm:$0xff]  ;;  %v228_v32 = vld [vmem:[%s722_s6 + $0x18] sm:$0xff] }
  0x19   :  { %395 = vmatpush3.msra.mxu1 %v142_v8  ;;  %424 = vmatpush3.msra.mxu0 %v239_v21  ;;  %v338_v33 = vld [vmem:[%s719_s3] ss:$0 sm:$0xff]  ;;  %v227_v38 = vld [vmem:[%s722_s6 + $0x10] sm:$0xff]  ;;  %v226_v39 = vld [vmem:[%s722_s6 + $0x8] sm:$0xff] }
  0x1a   :  { %396 = vmatprep.subr.mxu1 %v511_v0  ;;  %425 = vmatprep.subr.mxu0 %v511_v0  ;;  %v225_v40 = vld [vmem:[%s722_s6] sm:$0xff] }
  0x1b   :  { %397 = vmatpush3.msra.mxu1 %v141_v9  ;;  %426 = vmatpush3.msra.mxu0 %v238_v22  ;;  %v340_v41 = vld [vmem:[%s721_s5] ss:$0 sm:$0xff]  ;;  %s484_s5 = scalar_lea.vmem %s330_s11, 128 }
  0x1c   :  { %398 = vmatprep.subr.mxu1 %v511_v0  ;;  %427 = vmatprep.subr.mxu0 %v511_v0  ;;  %v341_v46 = vld [vmem:[%s723_s7] ss:$0 sm:$0xff]  ;;  %p485_p5 = scmp.ne.s32.totalorder %s330_s11, %s484_s5  ;;  %p490_p7 = scmp.lt.s32.totalorder %s484_s5, %s484_s5 }
  0x1d   :  { %399 = vmatpush3.msra.mxu1 %v140_v10  ;;  %428 = vmatpush3.msra.mxu0 %v237_v23 }
  0x1e   :  { %400 = vmatprep.subr.mxu1 %v511_v0  ;;  %429 = vmatprep.subr.mxu0 %v511_v0  ;;  %p491_p8 = por %p490_p7, %p489_p6 }
  0x1f   :  { %401 = vmatpush3.msra.mxu1 %v139_v11  ;;  %430 = vmatpush3.msra.mxu0 %v236_v24 }
  0x20   :  { %402 = vmatprep.subr.mxu1 %v511_v0  ;;  %431 = vmatprep.subr.mxu0 %v511_v0  ;;  %p492_p9 = pnand %p491_p8, %p485_p5 }
  0x21   :  { %403 = vmatpush3.msra.mxu1 %v138_v12  ;;  %432 = vmatpush3.msra.mxu0 %v235_v25 }
  0x22   :  { %404 = vmatprep.subr.mxu1 %v511_v0  ;;  %433 = vmatprep.subr.mxu0 %v511_v0 }
  0x23   :  { %405 = vmatpush3.msra.mxu1 %v137_v13  ;;  %434 = vmatpush3.msra.mxu0 %v234_v26 }
  0x24   :  { %406 = vmatprep.subr.mxu1 %v511_v0  ;;  %435 = vmatprep.subr.mxu0 %v511_v0 }
  0x25   :  { %407 = vmatpush3.msra.mxu1 %v136_v14  ;;  %436 = vmatpush3.msra.mxu0 %v233_v27 }
  0x26   :  { %408 = vmatprep.subr.mxu1 %v511_v0  ;;  %437 = vmatprep.subr.mxu0 %v511_v0 }
  0x27   :  { %409 = vmatpush3.msra.mxu1 %v135_v15  ;;  %438 = vmatpush3.msra.mxu0 %v232_v28 }
  0x28   :  { %410 = vmatprep.subr.mxu1 %v511_v0  ;;  %439 = vmatprep.subr.mxu0 %v511_v0 }
  0x29   :  { %411 = vmatpush3.msra.mxu1 %v134_v16  ;;  %440 = vmatpush3.msra.mxu0 %v231_v29 }
  0x2a   :  { %412 = vmatprep.subr.mxu1 %v511_v0  ;;  %441 = vmatprep.subr.mxu0 %v511_v0 }
  0x2b   :  { %413 = vmatpush3.msra.mxu1 %v133_v17  ;;  %442 = vmatpush3.msra.mxu0 %v230_v30 }
  0x2c   :  { %414 = vmatprep.subr.mxu1 %v511_v0  ;;  %443 = vmatprep.subr.mxu0 %v511_v0 }
  0x2d   :  { %415 = vmatpush3.msra.mxu1 %v132_v18  ;;  %444 = vmatpush3.msra.mxu0 %v229_v31 }
  0x2e   :  { %416 = vmatprep.subr.mxu1 %v511_v0  ;;  %445 = vmatprep.subr.mxu0 %v511_v0 }
  0x2f   :  { %417 = vmatpush3.msra.mxu1 %v131_v19  ;;  %446 = vmatpush3.msra.mxu0 %v228_v32 }
  0x30   :  { %447 = vmatprep.subr.mxu0 %v511_v0 }
  0x31   :  { %448 = vmatpush3.msra.mxu0 %v227_v38 }
  0x32   :  { %449 = vmatprep.subr.mxu0 %v511_v0 }
  0x33   :  { %450 = vmatpush3.msra.mxu0 %v226_v39 }
  0x34   :  { %451 = vmatprep.subr.mxu0 %v511_v0 }
  0x35   :  { %452 = vmatpush3.msra.mxu0 %v225_v40 }
  0xd4   :  { %v126_v34 = vpop.f32.mrf.mxu0 }
  0xd5   :  { %v127_v35 = vadd.f32 %v338_v33, %v126_v34 }
  0xd6   :  { %v385_v36 = vpop.f32.mrf.mxu0 }
  0xd7   :  { %v130_v37 = vmax.f32 %v127_v35, 0.0 }
  0xd9   :  { %419 = vmatmul.mubr.f32.vlgmr.msra.gmra.mxu1 %v130_v37 }
 0x199   :  { %v220_v42 = vpop.f32.mrf.mxu1 }
 0x19a   :  { %v221_v43 = vadd.f32 %v340_v41, %v220_v42 }
 0x19b   :  { %v420_v44 = vpop.f32.mrf.mxu1 }
 0x19c   :  { %v224_v45 = vmax.f32 %v221_v43, 0.0 }
 0x19e   :  { %454 = vmatmul.mubr.f32.vlgmr.msra.gmra.mxu0 %v224_v45 }
 0x25e   :  { %v314_v47 = vpop.f32.mrf.mxu0 }
 0x25f   :  { %v315_v48 = vadd.f32 %v341_v46, %v314_v47 }
 0x260   :  { %v455_v49 = vpop.f32.mrf.mxu0 }
 0x261   :  { %462 = vtanh.f32 %v315_v48 }
 0x26e   :  { %v463_v51 = vpop.eup %462 }
 0x26f   :  { %v320_v52 = vmul.f32 %v463_v51, %v319_v50 }
 0x271   :  { %322 = vst.msk [vmem:[#allocation6] sm:$0xff] %vm321_vm2, %v320_v52 }
 0x272   :  { %495 = shalt.err (!%p492_p9)
}
 0x273   :  { %332 = dma.vmem_to_hbm [thread:$0]  %s330_s11, 128, %s724_s8, [#allocation5]  }
 0x274   :  { %506 = dma.done.wait [#allocation5], 128  }
 0x275   :  { %507 = vsyncadd [#allocation5], 4294967168 }
 0x276   :  { %336 = vsyncpa [#allocation4], 1 }
 0x277   :  { %337 = vsyncpa [#allocation5], 1 }

</bundles_post_ra>
